<compile_context>
chip_gen: v7x
topology: tpu7x:2x2x1
jax: 0.10.0
libtpu: 0.0.40
codegen_flags: <defaults>
</compile_context>

<pallas_src>
import functools

import numpy as np
import jax
import jax.numpy as jnp
from jax import lax
from jax.experimental import pallas as pl
from jax.experimental.pallas import tpu as pltpu


def _round_up(x, m):
    return ((x + m - 1) // m) * m


# ----------------------------------------------------------------------------
# Kernel 1: decode + score + threshold mask, (N, D) tiles -> (8, N) lane-dense
# rows [x1, y1, x2, y2, conf, class_pred, valid, nms_score]
# ----------------------------------------------------------------------------
def _decode_kernel(pred_ref, det_ref, *, num_classes, conf_thre, n_anchors, tile_n):
    n = pl.program_id(1)
    # (tn, D) -> (D, tn): one in-VMEM relayout so features sit on sublanes and
    # anchors on the lane axis (lane-dense rows for all later math and stores).
    x = jnp.transpose(pred_ref[...])

    cx, cy = x[0:1, :], x[1:2, :]
    w, h = x[2:3, :], x[3:4, :]
    halfw = w * 0.5
    halfh = h * 0.5
    xmin = cx - halfw
    ymin = cy - halfh
    xmax = cx + halfw
    ymax = cy + halfh

    obj = x[4:5, :]
    cls = x[5:5 + num_classes, :]                          # (C, tn)

    class_conf = jnp.max(cls, axis=0, keepdims=True)       # (1, tn)
    ids = lax.broadcasted_iota(jnp.int32, cls.shape, 0)
    class_pred = jnp.min(
        jnp.where(cls == class_conf, ids, num_classes),
        axis=0, keepdims=True).astype(jnp.float32)         # first max index

    conf = obj * class_conf                                # (1, tn)
    # mask the (possibly out-of-bounds padded) tail of the last tile
    gidx = n * tile_n + lax.broadcasted_iota(jnp.int32, conf.shape, 1)
    valid = jnp.where((conf >= conf_thre) & (gidx < n_anchors), 1.0, 0.0)
    # NMS sort key of the torch reference: detections[:,4]*detections[:,-2] = conf^2
    score = jnp.where(valid > 0.0, conf * conf, 0.0)

    det_ref[...] = jnp.concatenate(
        [xmin, ymin, xmax, ymax, conf, class_pred, valid, score], axis=0)


def decode_pallas(prediction, num_classes, conf_thre):
    """prediction: (B, N, D) with D = 5 + num_classes.  Returns (B, 8, N) f32."""
    B, N, D = prediction.shape
    tn = min(512, _round_up(N, 128))
    grid_n = pl.cdiv(N, tn)
    kernel = functools.partial(_decode_kernel, num_classes=num_classes,
                               conf_thre=conf_thre, n_anchors=N, tile_n=tn)
    return pl.pallas_call(
        kernel,
        out_shape=jax.ShapeDtypeStruct((B, 8, N), jnp.float32),
        grid=(B, grid_n),
        in_specs=[pl.BlockSpec((None, tn, D), lambda b, n: (b, n, 0))],
        out_specs=pl.BlockSpec((None, 8, tn), lambda b, n: (b, 0, n)),
        compiler_params=pltpu.CompilerParams(
            dimension_semantics=("parallel", "parallel")),
    )(prediction)


# ----------------------------------------------------------------------------
# Kernel 2: class-agnostic greedy NMS over score-sorted, chunk-major candidates
# ----------------------------------------------------------------------------
def _nms_kernel(nv_ref, det_ref, detT_ref, keep_ref, mdiag_ref, supp_ref, *, nms_thre):
    b = pl.program_id(0)
    NC, TB = supp_ref.shape

    keep_ref[...] = jnp.zeros_like(keep_ref)
    supp_ref[...] = jnp.zeros_like(supp_ref)

    nv = jnp.minimum(nv_ref[b], NC * TB)
    n_chunks = (nv + TB - 1) // TB

    lane_tb = lax.broadcasted_iota(jnp.int32, (1, TB), 1)

    def chunk_body(c, carry):
        # chunk-c boxes, row layout (1, TB)
        x1d = det_ref[0, pl.ds(c, 1), :]
        y1d = det_ref[1, pl.ds(c, 1), :]
        x2d = det_ref[2, pl.ds(c, 1), :]
        y2d = det_ref[3, pl.ds(c, 1), :]
        vld = det_ref[6, pl.ds(c, 1), :]
        area_d = jnp.maximum(x2d - x1d, 0.0) * jnp.maximum(y2d - y1d, 0.0)

        # chunk-c boxes, column layout (TB, 1) (from the pre-transposed aux copy)
        dT = detT_ref[c]                                   # (TB, 8)
        x1c, y1c = dT[:, 0:1], dT[:, 1:2]
        x2c, y2c = dT[:, 2:3], dT[:, 3:4]
        area_c = jnp.maximum(x2c - x1c, 0.0) * jnp.maximum(y2c - y1c, 0.0)

        # within-chunk IoU > thr mask (cross-multiplied, no divides; symmetric,
        # no triangular gating: suppressing an already-decided box is a no-op)
        iw = jnp.maximum(jnp.minimum(x2c, x2d) - jnp.maximum(x1c, x1d), 0.0)
        ih = jnp.maximum(jnp.minimum(y2c, y2d) - jnp.maximum(y1c, y1d), 0.0)
        inter = iw * ih
        union = area_c + area_d - inter
        mdiag_ref[...] = jnp.where(inter > nms_thre * union, 1.0, 0.0)

        # serial greedy pass over this chunk -- one vreg (TB lanes) per step
        avail0 = jnp.where((vld > 0.0) & (supp_ref[pl.ds(c, 1), :] == 0.0), 1.0, 0.0)
        rem = jnp.minimum(nv - c * TB, TB)

        def step(t, st):
            kept_row, avail = st
            onehot = jnp.where(lane_tb == t, avail, 0.0)            # (1, TB)
            is_kept = jnp.max(onehot)                               # scalar 0/1
            kept_row = jnp.maximum(kept_row, onehot)
            avail = avail * (1.0 - is_kept * mdiag_ref[pl.ds(t, 1), :])
            return kept_row, avail

        kept_row, _ = lax.fori_loop(
            0, rem, step, (jnp.zeros((1, TB), jnp.float32), avail0))

        keep_ref[pl.ds(c, 1), :] = kept_row

        # propagate suppression from this chunk's kept boxes to later chunks:
        # per target chunk, a (TB, TB) IoU block (VPU) + one (1,TB)x(TB,TB)
        # bf16 matmul (MXU); bounded by the valid-chunk count.
        kept_bf = kept_row.astype(jnp.bfloat16)

        def prop_body(m, _):
            x1m = det_ref[0, pl.ds(m, 1), :]
            y1m = det_ref[1, pl.ds(m, 1), :]
            x2m = det_ref[2, pl.ds(m, 1), :]
            y2m = det_ref[3, pl.ds(m, 1), :]
            area_m = jnp.maximum(x2m - x1m, 0.0) * jnp.maximum(y2m - y1m, 0.0)
            iwm = jnp.maximum(jnp.minimum(x2c, x2m) - jnp.maximum(x1c, x1m), 0.0)
            ihm = jnp.maximum(jnp.minimum(y2c, y2m) - jnp.maximum(y1c, y1m), 0.0)
            inm = iwm * ihm
            unm = area_c + area_m - inm
            msk = jnp.where(inm > nms_thre * unm, 1.0, 0.0).astype(jnp.bfloat16)
            hit = jnp.dot(kept_bf, msk, preferred_element_type=jnp.float32)  # (1, TB)
            supp_ref[pl.ds(m, 1), :] = jnp.maximum(
                supp_ref[pl.ds(m, 1), :], jnp.where(hit > 0.5, 1.0, 0.0))
            return 0

        lax.fori_loop(c + 1, n_chunks, prop_body, 0)
        return carry

    lax.fori_loop(0, n_chunks, chunk_body, 0)


def nms_pallas(det_cm, det_t, num_valid, nms_thre):
    """det_cm: (B, 8, NC, TB) chunk-major, score-descending detections;
    det_t: (B, NC, TB, 8) transposed copy; num_valid: (B,) int32.
    Returns the keep mask (B, NC, TB) in {0, 1}."""
    B, _, NC, TB = det_cm.shape
    kernel = functools.partial(_nms_kernel, nms_thre=nms_thre)
    return pl.pallas_call(
        kernel,
        out_shape=jax.ShapeDtypeStruct((B, NC, TB), jnp.float32),
        grid_spec=pltpu.PrefetchScalarGridSpec(
            num_scalar_prefetch=1,                        # num_valid -> SMEM
            grid=(B,),
            in_specs=[pl.BlockSpec((None, 8, NC, TB), lambda b, nv: (b, 0, 0, 0)),
                      pl.BlockSpec((None, NC, TB, 8), lambda b, nv: (b, 0, 0, 0))],
            out_specs=pl.BlockSpec((None, NC, TB), lambda b, nv: (b, 0, 0)),
            scratch_shapes=[pltpu.VMEM((TB, TB), jnp.float32),    # diag IoU block
                            pltpu.VMEM((NC, TB), jnp.float32)]),  # suppression state
        compiler_params=pltpu.CompilerParams(
            dimension_semantics=("parallel",)),
    )(num_valid, det_cm, det_t)


# ----------------------------------------------------------------------------
# Module wrapper
# ----------------------------------------------------------------------------
class PostprocessExport:
    def __init__(self, conf_thre=0.7, nms_thre=0.45, num_classes=80,
                 object_pose=False, camera_matrix=None, task=None,
                 class_agnostic=True, max_nms_candidates=2048):
        self.conf_thre = float(conf_thre)
        self.nms_thre = float(nms_thre)
        self.num_classes = int(num_classes)
        self.object_pose = object_pose
        self.camera_matrix = camera_matrix
        self.task = task
        self.class_agnostic = class_agnostic
        self.max_nms_candidates = int(max_nms_candidates)
        # TODO(synk): object_pose / task=='human_pose' / class_agnostic=False
        # (batched_nms) branches of the torch reference are not implemented.
        assert not object_pose and task is None and class_agnostic

    def forward_arrays(self, prediction):
        """Fixed-shape stage: det_sorted (B, 8, K) and keep mask (B, K)."""
        B, N, D = prediction.shape
        assert D == 5 + self.num_classes
        prediction = prediction.astype(jnp.float32)

        det = decode_pallas(prediction, self.num_classes, self.conf_thre)  # (B,8,N)

        # NMS candidate cap (top-K by score); K is a multiple of the chunk size.
        # NOTE: if more than K boxes clear the confidence threshold, the excess
        # lowest-scoring ones are dropped (documented cap vs. the reference).
        K = int(min(self.max_nms_candidates, N))
        TB = 128 if K >= 128 else K
        K = max((K // TB) * TB, TB)
        NC = K // TB

        num_valid = jnp.sum(det[:, 6, :] > 0.5, axis=-1).astype(jnp.int32)
        nv = jnp.minimum(num_valid, K)
        # TODO(synk): fuse the valid-count and the top-K gather into the kernels
        # (scalar-prefetched `order`) to drop these small XLA passes over det.
        _, order = lax.top_k(det[:, 7, :], K)                      # (B, K) desc
        det_sorted = jnp.take_along_axis(det, order[:, None, :], axis=2)  # (B,8,K)

        det_cm = det_sorted.reshape(B, 8, NC, TB)
        det_t = jnp.transpose(det_sorted, (0, 2, 1)).reshape(B, NC, TB, 8)

        keep = nms_pallas(det_cm, det_t, nv, self.nms_thre).reshape(B, K)
        return det_sorted, keep

    def forward(self, prediction):
        det_sorted, keep = self.forward_arrays(prediction)
        det_np = np.asarray(det_sorted)                            # (B, 8, K)
        keep_np = np.asarray(keep) > 0.5                           # (B, K)
        # Ragged per-image list of [x1, y1, x2, y2, conf, class_pred], rows in
        # decreasing-score order, like the torch reference.
        out = []
        for b in range(det_np.shape[0]):
            rows = det_np[b].T[keep_np[b]]                         # (n_keep, 8)
            out.append(rows[:, :6])
        return out

    __call__ = forward


# ----------------------------------------------------------------------------
if __name__ == "__main__":
    key = jax.random.PRNGKey(0)
    B, N, C = 2, 384, 80
    k1, k2, k3 = jax.random.split(key, 3)
    cxcy = jax.random.uniform(k1, (B, N, 2), jnp.float32, 0.0, 640.0)
    wh = jax.random.uniform(k2, (B, N, 2), jnp.float32, 8.0, 128.0)
    scores = jax.random.uniform(k3, (B, N, 1 + C), jnp.float32)    # obj + classes
    prediction = jnp.concatenate([cxcy, wh, scores], axis=-1)      # (B, N, 85)

    # conf_thre=0.3 so the demo exercises the multi-chunk NMS path
    # (several hundred confidence-valid boxes -> 3 chunks of 128).
    post = PostprocessExport(conf_thre=0.3, nms_thre=0.45, num_classes=C)

    det_sorted, keep = post.forward_arrays(prediction)
    jax.block_until_ready((det_sorted, keep))
    assert det_sorted.shape == (B, 8, N) and keep.shape == (B, N)

    keep_np = np.asarray(keep)
    assert np.all((keep_np == 0.0) | (keep_np == 1.0))
    valid_np = np.asarray(det_sorted)[:, 6, :]
    assert np.all(valid_np[keep_np > 0.5] > 0.5)   # kept boxes cleared the threshold

    outputs = post.forward(prediction)             # host-side ragged gather
    assert len(outputs) == B
    for o in outputs:
        assert o.ndim == 2 and o.shape[1] == 6 and o.shape[0] >= 1
        assert np.isfinite(o).all()

    print("KERNEL_OK")
</pallas_src>

<mosaic_0001>
module attributes {stable_mosaic.version = 11 : i64} {
  func.func @_decode_kernel(%arg0: i32, %arg1: i32, %arg2: memref<1x384x85xf32, #tpu.memory_space<vmem>>, %arg3: memref<1x8x384xf32, #tpu.memory_space<vmem>>) attributes {dimension_semantics = [#tpu.dimension_semantics<parallel>, #tpu.dimension_semantics<parallel>], iteration_bounds = array<i64: 2, 1>, scalar_prefetch = 0 : i64, scratch_operands = 0 : i64, tpu.core_type = #tpu.core_type<tc>, window_params = [{transform_indices = @transform_0, window_bounds = array<i64: 1, 384, 85>}, {transform_indices = @transform_1, window_bounds = array<i64: 1, 8, 384>}]} {
    %c0 = arith.constant 0 : index
    %c0_0 = arith.constant 0 : index
    %c0_1 = arith.constant 0 : index
    %0 = vector.load %arg2[%c0, %c0_0, %c0_1] : memref<1x384x85xf32, #tpu.memory_space<vmem>>, vector<1x384x85xf32>
    %1 = vector.shape_cast %0 : vector<1x384x85xf32> to vector<384x85xf32>
    %2 = tpu.transpose %1, [1, 0] : vector<384x85xf32> -> vector<85x384xf32>
    %3 = vector.extract_strided_slice %2 {offsets = [0, 0], sizes = [1, 384], strides = [1, 1]} : vector<85x384xf32> to vector<1x384xf32>
    %4 = vector.extract_strided_slice %2 {offsets = [1, 0], sizes = [1, 384], strides = [1, 1]} : vector<85x384xf32> to vector<1x384xf32>
    %5 = vector.extract_strided_slice %2 {offsets = [2, 0], sizes = [1, 384], strides = [1, 1]} : vector<85x384xf32> to vector<1x384xf32>
    %6 = vector.extract_strided_slice %2 {offsets = [3, 0], sizes = [1, 384], strides = [1, 1]} : vector<85x384xf32> to vector<1x384xf32>
    %cst = arith.constant 5.000000e-01 : f32
    %7 = vector.broadcast %cst : f32 to vector<1x384xf32>
    %8 = arith.mulf %5, %7 : vector<1x384xf32>
    %cst_2 = arith.constant 5.000000e-01 : f32
    %9 = vector.broadcast %cst_2 : f32 to vector<1x384xf32>
    %10 = arith.mulf %6, %9 : vector<1x384xf32>
    %11 = arith.subf %3, %8 : vector<1x384xf32>
    %12 = arith.subf %4, %10 : vector<1x384xf32>
    %13 = arith.addf %3, %8 : vector<1x384xf32>
    %14 = arith.addf %4, %10 : vector<1x384xf32>
    %15 = vector.extract_strided_slice %2 {offsets = [4, 0], sizes = [1, 384], strides = [1, 1]} : vector<85x384xf32> to vector<1x384xf32>
    %16 = vector.extract_strided_slice %2 {offsets = [5, 0], sizes = [80, 384], strides = [1, 1]} : vector<85x384xf32> to vector<80x384xf32>
    %cst_3 = arith.constant dense<0xFF800000> : vector<384xf32>
    %17 = vector.multi_reduction <maximumf>, %16, %cst_3 [0] : vector<80x384xf32> to vector<384xf32>
    %18 = vector.shape_cast %17 : vector<384xf32> to vector<1x384xf32>
    %19 = tpu.iota {dimensions = array<i32: 0>} : vector<80x384xi32>
    %20 = vector.broadcast %18 : vector<1x384xf32> to vector<80x384xf32>
    %21 = arith.cmpf oeq, %16, %20 : vector<80x384xf32>
    %c80_i32 = arith.constant 80 : i32
    %22 = vector.broadcast %c80_i32 : i32 to vector<80x384xi32>
    %23 = arith.select %21, %19, %22 : vector<80x384xi1>, vector<80x384xi32>
    %cst_4 = arith.constant dense<2147483647> : vector<384xi32>
    %24 = vector.multi_reduction <minsi>, %23, %cst_4 [0] : vector<80x384xi32> to vector<384xi32>
    %25 = vector.shape_cast %24 : vector<384xi32> to vector<1x384xi32>
    %26 = arith.sitofp %25 : vector<1x384xi32> to vector<1x384xf32>
    %27 = arith.mulf %15, %18 : vector<1x384xf32>
    %c384_i32 = arith.constant 384 : i32
    %28 = arith.muli %arg1, %c384_i32 : i32
    %29 = tpu.iota {dimensions = array<i32: 1>} : vector<1x384xi32>
    %30 = vector.broadcast %28 : i32 to vector<1x384xi32>
    %31 = arith.addi %30, %29 : vector<1x384xi32>
    %cst_5 = arith.constant 3.000000e-01 : f32
    %32 = vector.broadcast %cst_5 : f32 to vector<1x384xf32>
    %33 = arith.cmpf oge, %27, %32 : vector<1x384xf32>
    %c384_i32_6 = arith.constant 384 : i32
    %34 = vector.broadcast %c384_i32_6 : i32 to vector<1x384xi32>
    %35 = arith.cmpi slt, %31, %34 : vector<1x384xi32>
    %36 = arith.andi %33, %35 : vector<1x384xi1>
    %cst_7 = arith.constant 1.000000e+00 : f32
    %cst_8 = arith.constant 0.000000e+00 : f32
    %37 = vector.broadcast %cst_7 : f32 to vector<1x384xf32>
    %38 = vector.broadcast %cst_8 : f32 to vector<1x384xf32>
    %39 = arith.select %36, %37, %38 : vector<1x384xi1>, vector<1x384xf32>
    %cst_9 = arith.constant 0.000000e+00 : f32
    %40 = vector.broadcast %cst_9 : f32 to vector<1x384xf32>
    %41 = arith.cmpf ogt, %39, %40 : vector<1x384xf32>
    %42 = arith.mulf %27, %27 : vector<1x384xf32>
    %cst_10 = arith.constant 0.000000e+00 : f32
    %43 = vector.broadcast %cst_10 : f32 to vector<1x384xf32>
    %44 = arith.select %41, %42, %43 : vector<1x384xi1>, vector<1x384xf32>
    %45 = tpu.concatenate %11, %12, %13, %14, %27, %26, %39, %44 in 0 : vector<1x384xf32>, vector<1x384xf32>, vector<1x384xf32>, vector<1x384xf32>, vector<1x384xf32>, vector<1x384xf32>, vector<1x384xf32>, vector<1x384xf32> -> vector<8x384xf32>
    %c0_11 = arith.constant 0 : index
    %c0_12 = arith.constant 0 : index
    %c0_13 = arith.constant 0 : index
    %46 = vector.load %arg3[%c0_11, %c0_12, %c0_13] : memref<1x8x384xf32, #tpu.memory_space<vmem>>, vector<1x8x384xf32>
    %47 = vector.shape_cast %46 : vector<1x8x384xf32> to vector<8x384xf32>
    %48 = vector.shape_cast %45 : vector<8x384xf32> to vector<1x8x384xf32>
    tpu.vector_store %arg3[%c0_11, %c0_12, %c0_13], %48 {strides = array<i32>} : memref<1x8x384xf32, #tpu.memory_space<vmem>>, vector<1x8x384xf32>,
    return
  }
  func.func @transform_0(%arg0: i32, %arg1: i32) -> (i32, i32, i32) {
    %c0_i32 = arith.constant 0 : i32
    %c0_i32_0 = arith.constant 0 : i32
    return %arg0, %arg1, %c0_i32 : i32, i32, i32
  }
  func.func @transform_1(%arg0: i32, %arg1: i32) -> (i32, i32, i32) {
    %c0_i32 = arith.constant 0 : i32
    %c0_i32_0 = arith.constant 0 : i32
    return %arg0, %c0_i32, %arg1 : i32, i32, i32
  }
}

</mosaic_0001>

<bundles_post_ra>
// kernel: tpu_custom_call.1
= control target key start
LH: loop header
LB: loop body
LE: loop exit
PB: predicated region body
PF: predicated region fallthrough
CT: control target
= control target key end

     0   :  { %6 = vsyncpa [#allocation3], 0  ;;  %s1362_s0 = inlined_call_operand.vmem [shape: f32[2,384,85], index: 0, kind: input, shape index: {}]   ;;  %s1363_s1 = inlined_call_operand.hbm [shape: f32[2,8,384], index: 1, kind: output, shape index: {}]  }
   0x1   :  { %8 = vsyncpa [#allocation3 + $0x1], 0  ;;  %s895_s6 = smov 0   ;;  %s897_s7 = smov 0  }
   0x2   :  { %s899_s8 = smov 0   ;;  %s901_s9 = smov 0  }
   0x3   :  { %s903_s10 = smov 0   ;;  %s905_s11 = smov 0  }
   0x4 LB: > { %s735_s12 = sadd.s32 4294967295, %s881_s11   ;;  %s736_s13 = sadd.s32 4294967294, %s881_s11   ;;  %s881_s11 = sphi %s905_s11, %s14_s11   ;;  %s877_s10 = sphi %s903_s10, %s1374_s10   ;;  %s873_s9 = sphi %s901_s9, %s1373_s9   ;;  %s869_s8 = sphi %s899_s8, %s1372_s8   ;;  %s865_s7 = sphi %s897_s7, %s1371_s7   ;;  %s861_s6 = sphi %s895_s6, %s1370_s6  }
   0x5   : > { %s26_s14 = sadd.s32 1, %s877_s10  ;;  %s63_s15 = sadd.s32 1, %s869_s8 }
   0x6   : > { %p28_p0 = scmp.ge.s32.totalorder %s26_s14, 2  ;;  %p73_p1 = scmp.ne.s32.totalorder %s869_s8, %s865_s7 }
   0x7   : > { %p74_p2 = scmp.eq.s32.totalorder %s735_s12, 1  ;;  %p79_p3 = scmp.ne.s32.totalorder %s865_s7, %s861_s6 }
   0x8   : > { %s1376_s14 = smov (%p28_p0, %s26_s14), 0  ;;  %p80_p5 = scmp.eq.s32.totalorder %s736_s13, 1 }
   0x9   : > { %p935_p4 = por %p74_p2, %p73_p1  ;;  %s58_s17 = ssub.s32 %s877_s10, %s1376_s14 }
   0xa   : > { %p739_p6 = scmp.ge.s32.totalorder %s881_s11, 1  ;;  %p61_p7 = scmp.eq.s32.totalorder %s58_s17, 0 }
   0xb   : > { %p942_p8 = por %p80_p5, %p79_p3  ;;  %p111_p9 = scmp.lt.s32.totalorder %s881_s11, 3 }
   0xc   : > { %s948_s19 = scalar_select %p61_p7, %s869_s8, %s63_s15  }
   0xd   : > { %p112_p10 = pnand %p739_p6, %p111_p9 }
   0xe   : > { %p136_p11 = scmp.lt.s32.totalorder (!%p112_p10), %s873_s9, 1  ;;  %vm308_vm0 = vcmask (!%p112_p10), 1047557   ;;  %vm318_vm1 = vcmask (!%p112_p10), 1044480   ;;  %s132_s25 = sand.u32 (!%p112_p10), 1, %s865_s7  }
   0xf   : > { %115 = sbr.rel (%p112_p10) target bundleno = 326 (0x146), region = 24  ;;  %s643_s4 = scalar_lea.sflag (!%p112_p10), [#allocation3], %s132_s25 }
  0x10   : > { %s744_s26 = smul.u32 (!%p112_p10), 24, %s132_s25 }
  0x11   : > { %s746_s28 = smul.u32 (!%p112_p10), 384, %s873_s9 }
  0x12   : > { %s1247_s27 = scalar_lea.vmem (!%p112_p10), [#allocation2], %s744_s26 }
  0x13   : > { %s659_s29 = sshll.u32 (!%p112_p10), %s1247_s27, 4  ;;  %s1311_s3 = scalar_lea.hbm (!%p112_p10), %s1363_s1, %s746_s28  ;;  %s1313_s29 = int_to_ptr.vmem [resolvable:$true] %s659_s29 }
  0x14   : > { %s803_s5 = scalar_lea.vmem (!%p112_p10), %s1313_s29, 384 }
  0x15   : > { %p804_p12 = scmp.ne.s32.totalorder (!%p112_p10), %s1313_s29, %s803_s5 }
  0x16   : > { %s137_s20 = scalar_select %p136_p11, %s873_s9, 1 }
  0x17   : > { %p805_p13 = pnand %p804_p12, %p935_p4  ;;  %s884_s9 = smov [#allocation2]  }
  0x18   : > { %s745_s21 = smul.u32 384, %s137_s20  ;;  %s807_s12 = sshll.u32 %s884_s9, 4  ;;  %s808_s12 = int_to_ptr.vmem [resolvable:$false] %s807_s12 }
  0x19   : > { %p806_p0 = pneg %p805_p13  ;;  %s809_s13 = scalar_lea.vmem %s808_s12, 768 }
  0x1a   : > { %s955_s24 = scalar_lea.vmem %s1362_s0, %s745_s21  ;;  %p810_p1 = scmp.lt.s32.totalorder %s1313_s29, %s808_s12 }
  0x1b   : > { %v162_v0 = vld [vmem:[%s955_s24 + $0x80] sm:$0xff]  ;;  %v163_v2 = vld [vmem:[%s955_s24 + $0x88] sm:$0xff]  ;;  %v164_v4 = vld [vmem:[%s955_s24 + $0x90] sm:$0xff]  ;;  %p811_p2 = scmp.lt.s32.totalorder %s809_s13, %s803_s5 }
  0x1c   : > { %v146_v1 = vld [vmem:[%s955_s24] sm:$0xff]  ;;  %226 = vxpose.xlu1.b32.start [1/16] (narrow) %v162_v0, 88  ;;  %v147_v3 = vld [vmem:[%s955_s24 + $0x8] sm:$0xff]  ;;  %v148_v5 = vld [vmem:[%s955_s24 + $0x10] sm:$0xff] }
  0x1d   : > { %194 = vxpose.xlu0.b32.start [1/16] (narrow) %v146_v1, 88  ;;  %v165_v6 = vld [vmem:[%s955_s24 + $0x98] sm:$0xff]  ;;  %v166_v8 = vld [vmem:[%s955_s24 + $0xa0] sm:$0xff]  ;;  %v167_v10 = vld [vmem:[%s955_s24 + $0xa8] sm:$0xff]  ;;  %p812_p3 = por %p811_p2, %p810_p1 }
  0x1e   : > { %v149_v7 = vld [vmem:[%s955_s24 + $0x18] sm:$0xff]  ;;  %v150_v9 = vld [vmem:[%s955_s24 + $0x20] sm:$0xff]  ;;  %v151_v11 = vld [vmem:[%s955_s24 + $0x28] sm:$0xff] }
  0x1f   : > { %v168_v12 = vld [vmem:[%s955_s24 + $0xb0] sm:$0xff]  ;;  %v169_v14 = vld [vmem:[%s955_s24 + $0xb8] sm:$0xff]  ;;  %v170_v16 = vld [vmem:[%s955_s24 + $0xc0] sm:$0xff]  ;;  %p813_p5 = pnand %p812_p3, %p806_p0 }
  0x20   : > { %227 = vxpose.xlu1.b32.cont [2/16] (narrow) %v163_v2, 88  ;;  %v152_v13 = vld [vmem:[%s955_s24 + $0x30] sm:$0xff]  ;;  %v153_v15 = vld [vmem:[%s955_s24 + $0x38] sm:$0xff]  ;;  %v154_v17 = vld [vmem:[%s955_s24 + $0x40] sm:$0xff] }
  0x21   : > { %195 = vxpose.xlu0.b32.cont [2/16] (narrow) %v147_v3, 88  ;;  %v171_v18 = vld [vmem:[%s955_s24 + $0xc8] sm:$0xff]  ;;  %v172_v20 = vld [vmem:[%s955_s24 + $0xd0] sm:$0xff]  ;;  %v173_v22 = vld [vmem:[%s955_s24 + $0xd8] sm:$0xff] }
  0x22   : > { %v155_v19 = vld [vmem:[%s955_s24 + $0x48] sm:$0xff]  ;;  %v156_v21 = vld [vmem:[%s955_s24 + $0x50] sm:$0xff]  ;;  %v157_v23 = vld [vmem:[%s955_s24 + $0x58] sm:$0xff] }
  0x23   : > { %v174_v24 = vld [vmem:[%s955_s24 + $0xe0] sm:$0xff]  ;;  %v175_v26 = vld [vmem:[%s955_s24 + $0xe8] sm:$0xff]  ;;  %v176_v28 = vld [vmem:[%s955_s24 + $0xf0] sm:$0xff] }
  0x24   : > { %228 = vxpose.xlu1.b32.cont [3/16] (narrow) %v164_v4, 88  ;;  %v158_v25 = vld [vmem:[%s955_s24 + $0x60] sm:$0xff]  ;;  %v159_v27 = vld [vmem:[%s955_s24 + $0x68] sm:$0xff]  ;;  %v160_v29 = vld [vmem:[%s955_s24 + $0x70] sm:$0xff] }
  0x25   : > { %196 = vxpose.xlu0.b32.cont [3/16] (narrow) %v148_v5, 88  ;;  %v177_v30 = vld [vmem:[%s955_s24 + $0xf8] sm:$0xff]  ;;  %v178_v32 = vld [vmem:[%s955_s24 + $0x100] sm:$0xff]  ;;  %v179_v33 = vld [vmem:[%s955_s24 + $0x108] sm:$0xff] }
  0x26   : > { %v161_v31 = vld [vmem:[%s955_s24 + $0x78] sm:$0xff]  ;;  %v180_v34 = vld [vmem:[%s955_s24 + $0x110] sm:$0xff]  ;;  %v182_v36 = vld [vmem:[%s955_s24 + $0x120] sm:$0xff] }
  0x27   : > { %v181_v35 = vld [vmem:[%s955_s24 + $0x118] sm:$0xff]  ;;  %v183_v37 = vld [vmem:[%s955_s24 + $0x128] sm:$0xff]  ;;  %v184_v38 = vld [vmem:[%s955_s24 + $0x130] sm:$0xff] }
  0x28   : > { %229 = vxpose.xlu1.b32.cont [4/16] (narrow) %v165_v6, 88  ;;  %v185_v39 = vld [vmem:[%s955_s24 + $0x138] sm:$0xff]  ;;  %v186_v40 = vld [vmem:[%s955_s24 + $0x140] sm:$0xff]  ;;  %v187_v41 = vld [vmem:[%s955_s24 + $0x148] sm:$0xff] }
  0x29   : > { %197 = vxpose.xlu0.b32.cont [4/16] (narrow) %v149_v7, 88  ;;  %v188_v42 = vld [vmem:[%s955_s24 + $0x150] sm:$0xff]  ;;  %v189_v43 = vld [vmem:[%s955_s24 + $0x158] sm:$0xff]  ;;  %v190_v44 = vld [vmem:[%s955_s24 + $0x160] sm:$0xff] }
  0x2a   : > { %v191_v45 = vld [vmem:[%s955_s24 + $0x168] sm:$0xff]  ;;  %v192_v46 = vld [vmem:[%s955_s24 + $0x170] sm:$0xff]  ;;  %v193_v47 = vld [vmem:[%s955_s24 + $0x178] sm:$0xff] }
  0x2c   : > { %230 = vxpose.xlu1.b32.cont [5/16] (narrow) %v166_v8, 88 }
  0x2d   : > { %198 = vxpose.xlu0.b32.cont [5/16] (narrow) %v150_v9, 88 }
  0x30   : > { %231 = vxpose.xlu1.b32.cont [6/16] (narrow) %v167_v10, 88 }
  0x31   : > { %199 = vxpose.xlu0.b32.cont [6/16] (narrow) %v151_v11, 88 }
  0x34   : > { %232 = vxpose.xlu1.b32.cont [7/16] (narrow) %v168_v12, 88 }
  0x35   : > { %200 = vxpose.xlu0.b32.cont [7/16] (narrow) %v152_v13, 88 }
  0x38   : > { %233 = vxpose.xlu1.b32.cont [8/16] (narrow) %v169_v14, 88 }
  0x39   : > { %201 = vxpose.xlu0.b32.cont [8/16] (narrow) %v153_v15, 88 }
  0x3c   : > { %234 = vxpose.xlu1.b32.cont [9/16] (narrow) %v170_v16, 88 }
  0x3d   : > { %202 = vxpose.xlu0.b32.cont [9/16] (narrow) %v154_v17, 88 }
  0x40   : > { %235 = vxpose.xlu1.b32.cont [10/16] (narrow) %v171_v18, 88  ;;  %v364_v18 = vlaneseq }
  0x41   : > { %203 = vxpose.xlu0.b32.cont [10/16] (narrow) %v155_v19, 88 }
  0x44   : > { %236 = vxpose.xlu1.b32.cont [11/16] (narrow) %v172_v20, 88 }
  0x45   : > { %204 = vxpose.xlu0.b32.cont [11/16] (narrow) %v156_v21, 88 }
  0x48   : > { %237 = vxpose.xlu1.b32.cont [12/16] (narrow) %v173_v22, 88 }
  0x49   : > { %205 = vxpose.xlu0.b32.cont [12/16] (narrow) %v157_v23, 88 }
  0x4c   : > { %238 = vxpose.xlu1.b32.cont [13/16] (narrow) %v174_v24, 88 }
  0x4d   : > { %206 = vxpose.xlu0.b32.cont [13/16] (narrow) %v158_v25, 88 }
  0x50   : > { %239 = vxpose.xlu1.b32.cont [14/16] (narrow) %v175_v26, 88 }
  0x51   : > { %207 = vxpose.xlu0.b32.cont [14/16] (narrow) %v159_v27, 88 }
  0x54   : > { %240 = vxpose.xlu1.b32.cont [15/16] (narrow) %v176_v28, 88 }
  0x55   : > { %208 = vxpose.xlu0.b32.cont [15/16] (narrow) %v160_v29, 88  ;;  %v365_v29 = vshrl.u32 %v364_v18, 7 }
  0x58   : > { %241 = vxpose.xlu1.b32.end [16/16] (narrow) %v177_v30, 88 }
  0x59   : > { %209 = vxpose.xlu0.b32.end [16/16] (narrow) %v161_v31, 88 }
  0x5d   : > { %258 = vxpose.xlu0.b32.start [1/16] (narrow) %v178_v32, 88 }
  0x61   : > { %259 = vxpose.xlu0.b32.cont [2/16] (narrow) %v179_v33, 88 }
  0x65   : > { %260 = vxpose.xlu0.b32.cont [3/16] (narrow) %v180_v34, 88  ;;  %v366_v34 = vadd.s32 8, %v365_v29 }
  0x69   : > { %261 = vxpose.xlu0.b32.cont [4/16] (narrow) %v181_v35, 88  ;;  %v367_v35 = vadd.s32 16, %v365_v29 }
  0x6d   : > { %262 = vxpose.xlu0.b32.cont [5/16] (narrow) %v182_v36, 88  ;;  %v368_v36 = vadd.s32 24, %v365_v29 }
  0x71   : > { %263 = vxpose.xlu0.b32.cont [6/16] (narrow) %v183_v37, 88 }
  0x75   : > { %264 = vxpose.xlu0.b32.cont [7/16] (narrow) %v184_v38, 88 }
  0x79   : > { %265 = vxpose.xlu0.b32.cont [8/16] (narrow) %v185_v39, 88  ;;  %v369_v39 = vadd.s32 32, %v365_v29 }
  0x7d   : > { %266 = vxpose.xlu0.b32.cont [9/16] (narrow) %v186_v40, 88  ;;  %v370_v40 = vadd.s32 40, %v365_v29 }
  0x81   : > { %267 = vxpose.xlu0.b32.cont [10/16] (narrow) %v187_v41, 88  ;;  %v371_v41 = vadd.s32 48, %v365_v29 }
  0x85   : > { %268 = vxpose.xlu0.b32.cont [11/16] (narrow) %v188_v42, 88  ;;  %v372_v42 = vadd.s32 56, %v365_v29 }
  0x89   : > { %269 = vxpose.xlu0.b32.cont [12/16] (narrow) %v189_v43, 88 }
  0x8d   : > { %270 = vxpose.xlu0.b32.cont [13/16] (narrow) %v190_v44, 88 }
  0x91   : > { %271 = vxpose.xlu0.b32.cont [14/16] (narrow) %v191_v45, 88  ;;  %v373_v45 = vadd.s32 64, %v365_v29 }
  0x95   : > { %272 = vxpose.xlu0.b32.cont [15/16] (narrow) %v192_v46, 88  ;;  %v374_v46 = vadd.s32 72, %v365_v29 }
  0x99   : > { %273 = vxpose.xlu0.b32.end [16/16] (narrow) %v193_v47, 88  ;;  %v1075_v47 = vrot.slane %v365_v29, 3 }
  0x9c   : > { %v1005_v48 = vpop.trf.xlu1 }
  0x9d   : > { %v1007_v49 = vpop.trf.xlu0  ;;  %v328_v60 = vsel %vm308_vm0, %v1005_v48, -inf }
  0x9e   : > { %v309_v0 = vsel %vm308_vm0, %v1007_v49, -inf }
  0xa0   : > { %v1009_v50 = vpop.trf.xlu1 }
  0xa1   : > { %v1011_v51 = vpop.trf.xlu0 }
  0xa4   : > { %v1013_v52 = vpop.trf.xlu1 }
  0xa5   : > { %v1015_v53 = vpop.trf.xlu0  ;;  %v329_v63 = vmax.f32 %v328_v60, %v1013_v52  ;;  %v409_v60 = vrot.slane %v366_v34, 3 }
  0xa6   : > { %v310_v4 = vmax.f32 %v309_v0, %v1015_v53  ;;  %v413_v0 = vrot.slane %v368_v36, 3 }
  0xa8   : > { %v1017_v54 = vpop.trf.xlu1 }
  0xa9   : > { %v1019_v55 = vpop.trf.xlu0  ;;  %v330_v1 = vmax.f32 %v1009_v50, %v1017_v54 }
  0xaa   : > { %v311_v6 = vmax.f32 %v1011_v51, %v1019_v55 }
  0xac   : > { %v1021_v56 = vpop.trf.xlu1 }
  0xad   : > { %v1023_v57 = vpop.trf.xlu0  ;;  %v331_v5 = vmax.f32 %v329_v63, %v1021_v56  ;;  %v411_v63 = vrot.slane %v367_v35, 3 }
  0xae   : > { %v312_v10 = vmax.f32 %v310_v4, %v1023_v57  ;;  %v415_v4 = vrot.slane %v369_v39, 3 }
  0xaf   : > { %v1085_v18 = vsel %vm318_vm1, %v409_v60, %v411_v63 }
  0xb0   : > { %v1025_v58 = vpop.trf.xlu1 }
  0xb1   : > { %v1027_v59 = vpop.trf.xlu0  ;;  %v332_v7 = vmax.f32 %v330_v1, %v1025_v58 }
  0xb2   : > { %v313_v12 = vmax.f32 %v311_v6, %v1027_v59  ;;  %v419_v6 = vrot.slane %v371_v41, 3 }
  0xb4   : > { %v1031_v61 = vpop.trf.xlu1 }
  0xb5   : > { %v1033_v62 = vpop.trf.xlu0  ;;  %v333_v11 = vmax.f32 %v331_v5, %v1031_v61  ;;  %v417_v5 = vrot.slane %v370_v40, 3 }
  0xb6   : > { %v314_v16 = vmax.f32 %v312_v10, %v1033_v62 }
  0xb8   : > { %v1040_v2 = vpop.trf.xlu1 }
  0xb9   : > { %v1042_v3 = vpop.trf.xlu0  ;;  %v334_v13 = vmax.f32 %v332_v7, %v1040_v2 }
  0xba   : > { %v315_v19 = vmax.f32 %v313_v12, %v1042_v3  ;;  %v421_v12 = vrot.slane %v372_v42, 3 }
  0xbc   : > { %v1049_v8 = vpop.trf.xlu1 }
  0xbd   : > { %v1051_v9 = vpop.trf.xlu0  ;;  %v335_v17 = vmax.f32 %v333_v11, %v1049_v8  ;;  %v1079_v11 = vsel %vm318_vm1, %v1075_v47, %v409_v60 }
  0xbe   : > { %v316_v20 = vmax.f32 %v314_v16, %v1051_v9  ;;  %v1081_v16 = vrot.slane %v374_v46, 3 }
  0xc0   : > { %v1057_v14 = vpop.trf.xlu1 }
  0xc1   : > { %v1059_v15 = vpop.trf.xlu0  ;;  %v336_v21 = vmax.f32 %v334_v13, %v1057_v14  ;;  %v423_v13 = vrot.slane %v373_v45, 3 }
  0xc2   : > { %v317_v26 = vmax.f32 %v315_v19, %v1059_v15  ;;  %v1088_v19 = vsel %vm318_vm1, %v411_v63, %v413_v0 }
  0xc3   : > { %v1117_v29 = vsel %vm318_vm1, %v423_v13, %v1081_v16 }
  0xc4   : > { %v1066_v22 = vpop.trf.xlu1 }
  0xc5   : > { %v1068_v23 = vpop.trf.xlu0  ;;  %v337_v24 = vsel %vm318_vm1, %v1066_v22, -inf }
  0xc6   : > { %v319_v25 = vsel %vm318_vm1, %v1068_v23, -inf  ;;  %v338_v27 = vmax.f32 %v335_v17, %v337_v24  ;;  %v291_v17 = vmul.f32 0.5, %v1005_v48  ;;  %v1096_v24 = vsel %vm318_vm1, %v415_v4, %v417_v5 }
  0xc7   : > { %v320_v28 = vmax.f32 %v316_v20, %v319_v25  ;;  %v1099_v25 = vsel %vm318_vm1, %v417_v5, %v419_v6 }
  0xc8   : > { %v339_v30 = vmax.f32 %v338_v27, %v336_v21  ;;  %v1093_v21 = vsel %vm318_vm1, %v413_v0, %v415_v4  ;;  %v1110_v27 = vsel %vm318_vm1, %v419_v6, %v421_v12 }
  0xc9   : > { %v321_v31 = vmax.f32 %v320_v28, %v317_v26  ;;  %v1113_v28 = vsel %vm318_vm1, %v421_v12, %v423_v13 }
  0xca   : > { %v340_v32 = vrot.slane %v339_v30, 4 }
  0xcb   : > { %v322_v33 = vrot.slane %v321_v31, 4 }
  0xcc   : > { %v341_v37 = vmax.f32 %v339_v30, %v340_v32  ;;  %v1122_v30 = vmul.f32 0.5, %v1007_v49 }
  0xcd   : > { %v323_v38 = vmax.f32 %v321_v31, %v322_v33 }
  0xce   : > { %v342_v43 = vrot.slane %v341_v37, 2 }
  0xcf   : > { %v324_v44 = vrot.slane %v323_v38, 2 }
  0xd0   : > { %v343_v1 = vmax.f32 %v341_v37, %v342_v43 }
  0xd1   : > { %v325_v7 = vmax.f32 %v323_v38, %v324_v44 }
  0xd2   : > { %v344_v10 = vrot.slane %v343_v1, 1 }
  0xd3   : > { %v326_v26 = vrot.slane %v325_v7, 1 }
  0xd4   : > { %v1090_v20 = vmax.f32 %v343_v1, %v344_v10 }
  0xd6   : > { %vm376_vm2 = vcmp.eq.f32.partialorder %v1005_v48, %v1090_v20  ;;  %vm379_vm3 = vcmp.eq.f32.partialorder %v1009_v50, %v1090_v20  ;;  %vm382_vm4 = vcmp.eq.f32.partialorder %v1013_v52, %v1090_v20  ;;  %vm385_vm5 = vcmp.eq.f32.partialorder %v1017_v54, %v1090_v20 }
  0xd7   : > { %vm391_vm6 = vcmp.eq.f32.partialorder %v1025_v58, %v1090_v20  ;;  %v297_v50 = vrot.slane %v291_v17, 2  ;;  %vm388_vm7 = vcmp.eq.f32.partialorder %v1021_v56, %v1090_v20  ;;  %v428_v52 = vsel %vm376_vm2, %v1075_v47, 80 }
  0xd8   : > { %vm397_vm8 = vcmp.eq.f32.partialorder %v1040_v2, %v1090_v20  ;;  %v431_v54 = vsel %vm379_vm3, %v1079_v11, 80  ;;  %v434_v31 = vsel %vm382_vm4, %v1085_v18, 80  ;;  %v437_v32 = vsel %vm385_vm5, %v1088_v19, 80 }
  0xd9   : > { %vm394_vm9 = vcmp.eq.f32.partialorder %v1031_v61, %v1090_v20  ;;  %vm403_vm10 = vcmp.eq.f32.partialorder %v1057_v14, %v1090_v20  ;;  %v443_v58 = vsel %vm391_vm6, %v1096_v24, 80  ;;  %v1137_v56 = vmax.f32 %v325_v7, %v326_v26 }
  0xda   : > { %vm406_vm11 = vcmp.eq.f32.partialorder %v1066_v22, %v1090_v20  ;;  %v440_v2 = vsel %vm388_vm7, %v1093_v21, 80  ;;  %v491_v33 = vsel %vm308_vm0, %v428_v52, 2147483647  ;;  %vm494_vm12 = vcmp.lt.s32.totalorder %v431_v54, %v437_v32 }
  0xdb   : > { %vm400_vm13 = vcmp.eq.f32.partialorder %v1049_v8, %v1090_v20  ;;  %v449_v61 = vsel %vm397_vm8, %v1110_v27, 80  ;;  %vm492_vm14 = vcmp.lt.s32.totalorder %v491_v33, %v434_v31  ;;  %v495_v34 = vsel %vm494_vm12, %v431_v54, %v437_v32 }
  0xdc   : > { %v1149_v36 = vadd.f32 %v297_v50, %v1005_v48  ;;  %v446_v37 = vsel %vm394_vm9, %v1099_v25, 80  ;;  %v493_v22 = vsel %vm492_vm14, %v491_v33, %v434_v31  ;;  %vm498_vm15 = vcmp.lt.s32.totalorder %v495_v34, %v443_v58 }
  0xdd   : > { %v1146_v35 = vpop.trf.xlu0  ;;  %v455_v38 = vsel %vm403_vm10, %v1117_v29, 80  ;;  %v458_v8 = vsel %vm406_vm11, %v1081_v16, 80  ;;  %vm496_vm2 = vcmp.lt.s32.totalorder %v493_v22, %v440_v2  ;;  %v499_v39 = vsel %vm498_vm15, %v495_v34, %v443_v58 }
  0xde   : > { %v452_v40 = vsel %vm400_vm13, %v1113_v28, 80  ;;  %v497_v41 = vsel %vm496_vm2, %v493_v22, %v440_v2  ;;  %vm502_vm3 = vcmp.lt.s32.totalorder %v499_v39, %v449_v61  ;;  %vm375_vm4 = vcmp.eq.f32.partialorder %v1007_v49, %v1137_v56 }
  0xdf   : > { %vm500_vm5 = vcmp.lt.s32.totalorder %v497_v41, %v446_v37  ;;  %v503_v42 = vsel %vm502_vm3, %v499_v39, %v449_v61  ;;  %vm378_vm6 = vcmp.eq.f32.partialorder %v1011_v51, %v1137_v56  ;;  %vm384_vm7 = vcmp.eq.f32.partialorder %v1019_v55, %v1137_v56 }
  0xe0   : > { %v501_v43 = vsel %vm500_vm5, %v497_v41, %v446_v37  ;;  %vm506_vm8 = vcmp.lt.s32.totalorder %v503_v42, %v455_v38  ;;  %v508_v44 = vsel %vm318_vm1, %v458_v8, 2147483647  ;;  %vm381_vm9 = vcmp.eq.f32.partialorder %v1015_v53, %v1137_v56 }
  0xe1   : > { %v1164_v14 = vpop.trf.xlu0  ;;  %v303_v45 = vsub.f32 %v1005_v48, %v297_v50  ;;  %v593_v46 = vrot.slane %v1149_v36, 6  ;;  %vm504_vm10 = vcmp.lt.s32.totalorder %v501_v43, %v452_v40  ;;  %v507_v60 = vsel %vm506_vm8, %v503_v42, %v455_v38 }
  0xe2   : > { %v505_v63 = vsel %vm504_vm10, %v501_v43, %v452_v40  ;;  %v427_v51 = vsel %vm375_vm4, %v1075_v47, 80  ;;  %v430_v55 = vsel %vm378_vm6, %v1079_v11, 80  ;;  %v436_v0 = vsel %vm384_vm7, %v1088_v19, 80 }
  0xe3   : > { %vm509_vm11 = vcmp.lt.s32.totalorder %v505_v63, %v508_v44  ;;  %vm387_vm12 = vcmp.eq.f32.partialorder %v1023_v57, %v1137_v56  ;;  %vm390_vm13 = vcmp.eq.f32.partialorder %v1027_v59, %v1137_v56  ;;  %v433_v53 = vsel %vm381_vm9, %v1085_v18, 80 }
  0xe4   : > { %v510_v4 = vsel %vm509_vm11, %v505_v63, %v508_v44  ;;  %vm393_vm14 = vcmp.eq.f32.partialorder %v1033_v62, %v1137_v56  ;;  %vm396_vm15 = vcmp.eq.f32.partialorder %v1042_v3, %v1137_v56  ;;  %vm399_vm2 = vcmp.eq.f32.partialorder %v1051_v9, %v1137_v56 }
  0xe5   : > { %v1179_v1 = vpop.trf.xlu0  ;;  %vm511_vm3 = vcmp.lt.s32.totalorder %v510_v4, %v507_v60  ;;  %vm405_vm4 = vcmp.eq.f32.partialorder %v1068_v23, %v1137_v56  ;;  %v460_v59 = vsel %vm308_vm0, %v427_v51, 2147483647  ;;  %vm463_vm5 = vcmp.lt.s32.totalorder %v430_v55, %v436_v0 }
  0xe6   : > { %v512_v5 = vsel %vm511_vm3, %v510_v4, %v507_v60  ;;  %v442_v6 = vsel %vm390_vm13, %v1096_v24, 80  ;;  %vm461_vm6 = vcmp.lt.s32.totalorder %v460_v59, %v433_v53  ;;  %v464_v7 = vsel %vm463_vm5, %v430_v55, %v436_v0 }
  0xe7   : > { %v513_v10 = vrot.slane %v512_v5, 4  ;;  %v439_v12 = vsel %vm387_vm12, %v1093_v21, 80  ;;  %v462_v13 = vsel %vm461_vm6, %v460_v59, %v433_v53  ;;  %vm467_vm7 = vcmp.lt.s32.totalorder %v464_v7, %v442_v6 }
  0xe8   : > { %vm402_vm8 = vcmp.eq.f32.partialorder %v1059_v15, %v1137_v56  ;;  %v448_v26 = vsel %vm396_vm15, %v1110_v27, 80  ;;  %vm465_vm9 = vcmp.lt.s32.totalorder %v462_v13, %v439_v12  ;;  %v468_v50 = vsel %vm467_vm7, %v464_v7, %v442_v6 }
  0xe9   : > { %v1195_v17 = vpop.trf.xlu0  ;;  %vm514_vm10 = vcmp.lt.s32.totalorder %v512_v5, %v513_v10  ;;  %v445_v57 = vsel %vm393_vm14, %v1099_v25, 80  ;;  %v466_v52 = vsel %vm465_vm9, %v462_v13, %v439_v12  ;;  %vm471_vm11 = vcmp.lt.s32.totalorder %v468_v50, %v448_v26 }
  0xea   : > { %v515_v54 = vsel %vm514_vm10, %v512_v5, %v513_v10  ;;  %v457_v15 = vsel %vm405_vm4, %v1081_v16, 80  ;;  %vm469_vm12 = vcmp.lt.s32.totalorder %v466_v52, %v445_v57  ;;  %v472_v31 = vsel %vm471_vm11, %v468_v50, %v448_v26 }
  0xeb   : > { %v516_v3 = vrot.slane %v515_v54, 2  ;;  %v451_v32 = vsel %vm399_vm2, %v1113_v28, 80  ;;  %v454_v58 = vsel %vm402_vm8, %v1117_v29, 80  ;;  %v470_v62 = vsel %vm469_vm12, %v466_v52, %v445_v57 }
  0xec   : > { %vm616_vm13 = vcmask 1041408   ;;  %vm473_vm14 = vcmp.lt.s32.totalorder %v470_v62, %v451_v32  ;;  %vm475_vm15 = vcmp.lt.s32.totalorder %v472_v31, %v454_v58  ;;  %v477_v33 = vsel %vm318_vm1, %v457_v15, 2147483647 }
  0xed   : > { %v1216_v2 = vpop.trf.xlu0  ;;  %vm517_vm3 = vcmp.lt.s32.totalorder %v515_v54, %v516_v3  ;;  %v474_v23 = vsel %vm473_vm14, %v470_v62, %v451_v32  ;;  %v557_v61 = vmul.f32 %v1090_v20, %v1005_v48  ;;  %v618_v9 = vsel %vm616_vm13, %v303_v45, %v593_v46 }
  0xee   : > { %v296_v34 = vrot.slane %v1122_v30, 2  ;;  %v518_v37 = vsel %vm517_vm3, %v515_v54, %v516_v3  ;;  %vm478_vm2 = vcmp.lt.s32.totalorder %v474_v23, %v477_v33  ;;  %v476_v38 = vsel %vm475_vm15, %v472_v31, %v454_v58 }
  0xef   : > { %v519_v22 = vrot.slane %v518_v37, 1  ;;  %v479_v8 = vsel %vm478_vm2, %v474_v23, %v477_v33  ;;  %vm569_vm4 = vcmp.ge.f32.partialorder %v557_v61, 0.3  ;;  %vm620_vm5 = vcmask 1042432  }
  0xf0   : > { %vm480_vm6 = vcmp.lt.s32.totalorder %v479_v8, %v476_v38  ;;  %v556_v48 = vmul.f32 %v1137_v56, %v1007_v49  ;;  %v622_v20 = vsel %vm620_vm5, %v618_v9, %v593_v46  ;;  %v883_v40 = vmov 0.0  }
  0xf1   : > { %v1225_v39 = vpop.trf.xlu0  ;;  %vm520_vm7 = vcmp.lt.s32.totalorder %v518_v37, %v519_v22  ;;  %v481_v30 = vsel %vm480_vm6, %v479_v8, %v476_v38  ;;  %v578_v41 = vsel %vm569_vm4, 1.0, %v883_v40  ;;  %v584_v44 = vmul.f32 %v557_v61, %v557_v61 }
  0xf2   : > { %v521_v42 = vsel %vm520_vm7, %v518_v37, %v519_v22  ;;  %v482_v43 = vrot.slane %v481_v30, 4  ;;  %vm581_vm8 = vcmp.gt.f32.partialorder %v578_v41, 0.0  ;;  %v305_v45 = vadd.f32 %v296_v34, %v1007_v49 }
  0xf3   : > { %v554_v60 = vcvt.s32.f32 %v521_v42  ;;  %vm624_vm9 = vcmask 1043456   ;;  %vm568_vm11 = vcmp.ge.f32.partialorder %v556_v48, 0.3  ;;  %v587_v56 = vsel %vm581_vm8, %v584_v44, 0.0 }
  0xf4   : > { %vm483_vm10 = vcmp.lt.s32.totalorder %v481_v30, %v482_v43  ;;  %vm1365_vm12 = vcmask 1045504   ;;  %v602_v46 = vrot.slane %v578_v41, 6  ;;  %v626_v51 = vsel %vm624_vm9, %v622_v20, %v557_v61 }
  0xf5   : > { %v1237_v63 = vpop.trf.xlu0  ;;  %v484_v36 = vsel %vm483_vm10, %v481_v30, %v482_v43  ;;  %vm1364_vm14 = vcmask 1046528   ;;  %v611_v0 = vrot.slane %v587_v56, 5  ;;  %v629_v53 = vsel %vm318_vm1, %v626_v51, %v554_v60 }
  0xf6   : > { %v485_v55 = vrot.slane %v484_v36, 2  ;;  %v302_v4 = vsub.f32 %v1007_v49, %v296_v34  ;;  %v592_v59 = vrot.slane %v305_v45, 6  ;;  %v577_v6 = vsel %vm568_vm11, 1.0, %v883_v40 }
  0xf7   : > { %v633_v7 = vsel %vm1365_vm12, %v629_v53, %v602_v46  ;;  %v583_v13 = vmul.f32 %v556_v48, %v556_v48  ;;  %vm580_vm3 = vcmp.gt.f32.partialorder %v577_v6, 0.0  ;;  %v346_v57 = vsel %vm308_vm0, %v1146_v35, -inf }
  0xf8   : > { %vm486_vm15 = vcmp.lt.s32.totalorder %v484_v36, %v485_v55  ;;  %v637_v10 = vsel %vm1364_vm14, %v633_v7, %v611_v0  ;;  %v617_v49 = vsel %vm616_vm13, %v302_v4, %v592_v59  ;;  %v347_v54 = vmax.f32 %v346_v57, %v1179_v1 }
  0xf9   : > { %v1242_v5 = vpop.trf.xlu0  ;;  %v487_v12 = vsel %vm486_vm15, %v484_v36, %v485_v55  ;;  %640 = vst [vmem:[%s1247_s27 + $0x8] sm:$0xff] %v637_v10  ;;  %v586_v15 = vsel %vm580_vm3, %v583_v13, 0.0  ;;  %v621_v31 = vsel %vm620_vm5, %v617_v49, %v592_v59  ;;  %v348_v32 = vmax.f32 %v1164_v14, %v1195_v17 }
  0xfa   : > { %v488_v26 = vrot.slane %v487_v12, 1  ;;  %v349_v58 = vmax.f32 %v347_v54, %v1216_v2  ;;  %v601_v23 = vrot.slane %v577_v6, 6  ;;  %v625_v33 = vsel %vm624_vm9, %v621_v31, %v556_v48 }
  0xfb   : > { %v610_v61 = vrot.slane %v586_v15, 5  ;;  %v350_v34 = vmax.f32 %v348_v32, %v1225_v39  ;;  %v292_v59 = vmul.f32 0.5, %v1146_v35 }
  0xfc   : > { %vm489_vm2 = vcmp.lt.s32.totalorder %v487_v12, %v488_v26  ;;  %v351_v37 = vmax.f32 %v349_v58, %v1237_v63 }
  0xfd   : > { %v1251_v50 = vpop.trf.xlu0  ;;  %v490_v52 = vsel %vm489_vm2, %v487_v12, %v488_v26  ;;  %v352_v8 = vmax.f32 %v350_v34, %v1242_v5 }
  0xfe   : > { %v553_v3 = vcvt.s32.f32 %v490_v52  ;;  %v353_v20 = vmax.f32 %v351_v37, %v1251_v50 }
 0x100   : > { %v628_v9 = vsel %vm318_vm1, %v625_v33, %v553_v3 }
 0x101   : > { %v283_v62 = vpop.trf.xlu0  ;;  %v632_v22 = vsel %vm1365_vm12, %v628_v9, %v601_v23 }
 0x102   : > { %v636_v38 = vsel %vm1364_vm14, %v632_v22, %v610_v61  ;;  %v354_v48 = vmax.f32 %v352_v8, %v283_v62 }
 0x103   : > { %639 = vst [vmem:[%s1247_s27] sm:$0xff] %v636_v38 }
 0x105   : > { %v284_v30 = vpop.trf.xlu0 }
 0x106   : > { %v355_v41 = vsel %vm318_vm1, %v284_v30, -inf }
 0x107   : > { %v356_v42 = vmax.f32 %v353_v20, %v355_v41 }
 0x109   : > { %v357_v43 = vmax.f32 %v356_v42, %v354_v48 }
 0x10b   : > { %v358_v44 = vrot.slane %v357_v43, 4 }
 0x10d   : > { %v359_v45 = vmax.f32 %v357_v43, %v358_v44 }
 0x10f   : > { %v360_v60 = vrot.slane %v359_v45, 2 }
 0x111   : > { %v361_v56 = vmax.f32 %v359_v45, %v360_v60 }
 0x113   : > { %v362_v36 = vrot.slane %v361_v56, 1 }
 0x115   : > { %v363_v46 = vmax.f32 %v361_v56, %v362_v36 }
 0x117   : > { %vm377_vm4 = vcmp.eq.f32.partialorder %v1146_v35, %v363_v46  ;;  %vm380_vm6 = vcmp.eq.f32.partialorder %v1164_v14, %v363_v46  ;;  %vm383_vm7 = vcmp.eq.f32.partialorder %v1179_v1, %v363_v46  ;;  %vm386_vm8 = vcmp.eq.f32.partialorder %v1195_v17, %v363_v46 }
 0x118   : > { %v429_v51 = vsel %vm377_vm4, %v1075_v47, 80  ;;  %vm392_vm10 = vcmp.eq.f32.partialorder %v1225_v39, %v363_v46  ;;  %v432_v55 = vsel %vm380_vm6, %v1079_v11, 80  ;;  %v435_v0 = vsel %vm383_vm7, %v1085_v18, 80 }
 0x119   : > { %v438_v53 = vsel %vm386_vm8, %v1088_v19, 80  ;;  %vm389_vm11 = vcmp.eq.f32.partialorder %v1216_v2, %v363_v46  ;;  %vm395_vm15 = vcmp.eq.f32.partialorder %v1237_v63, %v363_v46  ;;  %vm398_vm3 = vcmp.eq.f32.partialorder %v1242_v5, %v363_v46 }
 0x11a   : > { %v522_v14 = vsel %vm308_vm0, %v429_v51, 2147483647  ;;  %vm525_vm2 = vcmp.lt.s32.totalorder %v432_v55, %v438_v53  ;;  %vm401_vm14 = vcmp.eq.f32.partialorder %v1251_v50, %v363_v46  ;;  %v444_v47 = vsel %vm392_vm10, %v1096_v24, 80 }
 0x11b   : > { %vm523_vm4 = vcmp.lt.s32.totalorder %v522_v14, %v435_v0  ;;  %v526_v1 = vsel %vm525_vm2, %v432_v55, %v438_v53  ;;  %vm407_vm6 = vcmp.eq.f32.partialorder %v284_v30, %v363_v46  ;;  %v441_v11 = vsel %vm389_vm11, %v1093_v21, 80 }
 0x11c   : > { %v524_v18 = vsel %vm523_vm4, %v522_v14, %v435_v0  ;;  %vm529_vm7 = vcmp.lt.s32.totalorder %v526_v1, %v444_v47  ;;  %vm404_vm8 = vcmp.eq.f32.partialorder %v283_v62, %v363_v46  ;;  %v450_v19 = vsel %vm398_vm3, %v1110_v27, 80 }
 0x11d   : > { %vm527_vm12 = vcmp.lt.s32.totalorder %v524_v18, %v441_v11  ;;  %v530_v17 = vsel %vm529_vm7, %v526_v1, %v444_v47  ;;  %v447_v2 = vsel %vm395_vm15, %v1099_v25, 80  ;;  %v459_v24 = vsel %vm407_vm6, %v1081_v16, 80 }
 0x11e   : > { %v528_v39 = vsel %vm527_vm12, %v524_v18, %v441_v11  ;;  %vm533_vm0 = vcmp.lt.s32.totalorder %v530_v17, %v450_v19  ;;  %v453_v21 = vsel %vm401_vm14, %v1113_v28, 80  ;;  %v456_v27 = vsel %vm404_vm8, %v1117_v29, 80 }
 0x11f   : > { %vm531_vm10 = vcmp.lt.s32.totalorder %v528_v39, %v447_v2  ;;  %v534_v4 = vsel %vm533_vm0, %v530_v17, %v450_v19  ;;  %v539_v25 = vsel %vm318_vm1, %v459_v24, 2147483647  ;;  %v298_v63 = vrot.slane %v292_v59, 2 }
 0x120   : > { %v532_v5 = vsel %vm531_vm10, %v528_v39, %v447_v2  ;;  %vm537_vm3 = vcmp.lt.s32.totalorder %v534_v4, %v456_v27  ;;  %v558_v10 = vmul.f32 %v363_v46, %v1146_v35  ;;  %vm1368_vm8 = vcmask 1045504  }
 0x121   : > { %vm535_vm11 = vcmp.lt.s32.totalorder %v532_v5, %v453_v21  ;;  %v538_v7 = vsel %vm537_vm3, %v534_v4, %v456_v27  ;;  %v307_v26 = vadd.f32 %v298_v63, %v1146_v35  ;;  %v304_v57 = vsub.f32 %v1146_v35, %v298_v63 }
 0x122   : > { %v536_v6 = vsel %vm535_vm11, %v532_v5, %v453_v21  ;;  %vm570_vm2 = vcmp.ge.f32.partialorder %v558_v10, 0.3  ;;  %v585_v54 = vmul.f32 %v558_v10, %v558_v10 }
 0x123   : > { %vm540_vm12 = vcmp.lt.s32.totalorder %v536_v6, %v539_v25  ;;  %v594_v49 = vrot.slane %v307_v26, 6  ;;  %v579_v50 = vsel %vm570_vm2, 1.0, %v883_v40 }
 0x124   : > { %v541_v16 = vsel %vm540_vm12, %v536_v6, %v539_v25  ;;  %vm582_vm6 = vcmp.gt.f32.partialorder %v579_v50, 0.0  ;;  %v603_v40 = vrot.slane %v579_v50, 6 }
 0x125   : > { %vm542_vm15 = vcmp.lt.s32.totalorder %v541_v16, %v538_v7  ;;  %v619_v31 = vsel %vm616_vm13, %v304_v57, %v594_v49  ;;  %v588_v32 = vsel %vm582_vm6, %v585_v54, 0.0  ;;  %vm1369_vm13 = vcmask 1046528  }
 0x126   : > { %v543_v12 = vsel %vm542_vm15, %v541_v16, %v538_v7  ;;  %v623_v58 = vsel %vm620_vm5, %v619_v31, %v594_v49  ;;  %v612_v23 = vrot.slane %v588_v32, 5 }
 0x127   : > { %v544_v13 = vrot.slane %v543_v12, 4  ;;  %v627_v35 = vsel %vm624_vm9, %v623_v58, %v558_v10 }
 0x129   : > { %vm545_vm14 = vcmp.lt.s32.totalorder %v543_v12, %v544_v13 }
 0x12a   : > { %v546_v28 = vsel %vm545_vm14, %v543_v12, %v544_v13 }
 0x12b   : > { %v547_v29 = vrot.slane %v546_v28, 2 }
 0x12d   : > { %vm548_vm4 = vcmp.lt.s32.totalorder %v546_v28, %v547_v29 }
 0x12e   : > { %v549_v52 = vsel %vm548_vm4, %v546_v28, %v547_v29 }
 0x12f   : > { %v550_v15 = vrot.slane %v549_v52, 1 }
 0x131   : > { %vm551_vm7 = vcmp.lt.s32.totalorder %v549_v52, %v550_v15 }
 0x132   : > { %v552_v3 = vsel %vm551_vm7, %v549_v52, %v550_v15 }
 0x133   : > { %v555_v62 = vcvt.s32.f32 %v552_v3 }
 0x135   : > { %v630_v33 = vsel %vm318_vm1, %v627_v35, %v555_v62 }
 0x136   : > { %v634_v61 = vsel %vm1368_vm8, %v630_v33, %v603_v40 }
 0x137   : > { %v638_v9 = vsel %vm1369_vm13, %v634_v61, %v612_v23 }
 0x138   : > { %641 = vst [vmem:[%s1247_s27 + $0x10] sm:$0xff] %v638_v9 }
 0x139   : > { %816 = shalt.err (!%p813_p5)
}
 0x13a   : > { %s817_s15 = scalar_lea.hbm %s1311_s3, 384  ;;  %s821_s21 = scalar_lea.hbm %s1363_s1, 768 }
 0x13b   : > { %p818_p6 = scmp.ne.s32.totalorder %s1311_s3, %s817_s15  ;;  %p822_p10 = scmp.lt.u32.totalorder %s1311_s3, %s1363_s1 }
 0x13c   : > { %p823_p11 = scmp.lt.u32.totalorder %s821_s21, %s817_s15  ;;  %p825_p13 = scmp.lt.u32.totalorder %s817_s15, %s1311_s3 }
 0x13d   : > { %p819_p7 = pnand %p818_p6, %p935_p4 }
 0x13e   : > { %p824_p12 = por %p823_p11, %p822_p10 }
 0x13f   : > { %p820_p9 = pneg %p819_p7 }
 0x140   : > { %p826_p0 = por %p825_p13, %p824_p12 }
 0x142   : > { %p827_p1 = pnand %p826_p0, %p820_p9 }
 0x144   : > { %830 = shalt.err (!%p827_p1)
}
 0x145   : > { %747 = dma.vmem_to_hbm [thread:$0]  (%p935_p4), %s1313_s29, 384, %s1311_s3, %s643_s4  }
 0x146 PF: > { %p753_p2 = scmp.ge.s32.totalorder %s881_s11, 2  ;;  %s671_s24 = sand.u32 1, %s861_s6  }
 0x147   : > { %s672_s25 = scalar_lea.sflag [#allocation3], %s671_s24 }
 0x148   : > { %p750_p3 = pnand %p753_p2, %p942_p8 }
 0x14a   : > { %856 = dma.done.wait (!%p750_p3), %s672_s25, 384  }
 0x14b   : > { %858 = vsyncadd (!%p750_p3), %s672_s25, 4294966912  ;;  %s14_s11 = sadd.s32 1, %s881_s11   ;;  %s1370_s6 = smov %s865_s7 }
 0x14c   : > { %p11_p5 = scmp.ge.s32.totalorder %s14_s11, 4   ;;  %s1371_s7 = smov %s869_s8 }
 0x14d   : > { %s1372_s8 = smov %s948_s19  ;;  %s1373_s9 = smov %s877_s10 }
 0x14e   : > { %s1374_s10 = smov %s1376_s14  ;;  %13 = sbr.rel (!%p11_p5) target bundleno = 4 (0x4), region = 59 }
 0x155   :  { %677 = vsyncpa [#allocation3], 1 }
 0x156   :  { %679 = vsyncpa [#allocation3 + $0x1], 1 }

</bundles_post_ra>
